<compile_context>
chip_gen: v5e
topology: v5e:2x2
jax: 0.10.0
libtpu: 0.0.40
codegen_flags: <defaults>
</compile_context>

<pallas_src>
import functools

import jax
import jax.numpy as jnp
from jax.experimental import pallas as pl
from jax.experimental.pallas import tpu as pltpu

IN_FEATURES = 9
OUT_FEATURES = 9


def _round_up(n, m):
    return ((n + m - 1) // m) * m


def mlp_kernel(x_ref, w_in_ref, b_in_ref, w_hid_ref, b_hid_ref,
               w_out_ref, b_out_ref, o_ref, *, num_layers, model_type):
    # x / weights arrive as bf16 tiles; accumulate in f32 on the MXU, keep
    # bias-add / relu / sigmoid in f32 on the VPU/EUP (v5e has no bf16 VPU/EUP).
    h = jnp.dot(x_ref[...], w_in_ref[...], preferred_element_type=jnp.float32)
    h = jnp.maximum(h + b_in_ref[...], 0.0)

    # Hidden layers: static unroll (num_layers is small and compile-time known).
    # TODO(synk): switch to lax.fori_loop with dynamic w_hid_ref[l] indexing if
    # num_layers grows beyond a handful (keeps vreg live ranges bounded).
    for l in range(num_layers):
        h = jnp.dot(h.astype(w_hid_ref.dtype), w_hid_ref[l],
                    preferred_element_type=jnp.float32)
        h = jnp.maximum(h + b_hid_ref[l], 0.0)
        # dropout: identity in eval mode.
        # TODO(synk): training-mode dropout via pltpu.prng_seed / prng_random_bits.

    y = jnp.dot(h.astype(w_out_ref.dtype), w_out_ref[...],
                preferred_element_type=jnp.float32)
    y = y + b_out_ref[...]

    if model_type == "Regression":
        y = jnp.maximum(y, 0.0)
    else:  # Classification
        y = jax.nn.sigmoid(y)

    o_ref[...] = y.astype(o_ref.dtype)


def mlp_forward(x, params, model_type, *, tile_b=512):
    """x: (batch, 9) f32. params: f32 weights in (in, out) layout. Returns (batch, 9) f32."""
    w_in, b_in, w_hid, b_hid, w_out, b_out = params
    batch = x.shape[0]
    num_layers = w_hid.shape[0]
    layer_width = w_in.shape[1]

    # --- batch tiling: pad batch to a multiple of the row tile --------------
    padded = _round_up(batch, 8)
    tb = _round_up(min(tile_b, padded), 8)
    padded = _round_up(batch, tb)
    if padded != batch:
        x = jnp.pad(x, ((0, padded - batch), (0, 0)))
    grid = (padded // tb,)

    # --- bf16 MXU inputs, f32 accumulation ----------------------------------
    mx = jnp.bfloat16
    x_mx = x.astype(mx)
    w_in_mx = w_in.astype(mx)
    w_hid_mx = w_hid.astype(mx)
    w_out_mx = w_out.astype(mx)

    kernel = functools.partial(
        mlp_kernel, num_layers=num_layers, model_type=model_type
    )

    # x / out are tiled along the batch grid; all weights/biases stay resident
    # in VMEM across grid steps (index_map returns block 0 for every i).
    in_specs = [
        pl.BlockSpec((tb, IN_FEATURES), lambda i: (i, 0)),                    # x
        pl.BlockSpec((IN_FEATURES, layer_width), lambda i: (0, 0)),           # w_in
        pl.BlockSpec((1, layer_width), lambda i: (0, 0)),                     # b_in
        pl.BlockSpec((num_layers, layer_width, layer_width),
                     lambda i: (0, 0, 0)),                                    # w_hid
        pl.BlockSpec((num_layers, 1, layer_width), lambda i: (0, 0, 0)),      # b_hid
        pl.BlockSpec((layer_width, OUT_FEATURES), lambda i: (0, 0)),          # w_out
        pl.BlockSpec((1, OUT_FEATURES), lambda i: (0, 0)),                    # b_out
    ]
    out_specs = pl.BlockSpec((tb, OUT_FEATURES), lambda i: (i, 0))

    out = pl.pallas_call(
        kernel,
        out_shape=jax.ShapeDtypeStruct((padded, OUT_FEATURES), jnp.float32),
        grid=grid,
        in_specs=in_specs,
        out_specs=out_specs,
        compiler_params=pltpu.CompilerParams(
            dimension_semantics=("parallel",),   # shard batch tiles across TCs (v7x)
        ),
    )(x_mx, w_in_mx, b_in, w_hid_mx, b_hid, w_out_mx, b_out)

    return out[:batch]


def init_params(key, num_layers, layer_width):
    """PyTorch nn.Linear default init: U(-1/sqrt(fan_in), 1/sqrt(fan_in)); (in, out) layout."""
    def linear(key, fan_in, fan_out):
        kw, kb = jax.random.split(key)
        bound = 1.0 / jnp.sqrt(fan_in)
        w = jax.random.uniform(kw, (fan_in, fan_out), jnp.float32, -bound, bound)
        b = jax.random.uniform(kb, (1, fan_out), jnp.float32, -bound, bound)
        return w, b

    keys = jax.random.split(key, num_layers + 2)
    w_in, b_in = linear(keys[0], IN_FEATURES, layer_width)

    w_hid_list, b_hid_list = [], []
    for l in range(num_layers):
        w, b = linear(keys[1 + l], layer_width, layer_width)
        w_hid_list.append(w)
        b_hid_list.append(b)
    w_hid = jnp.stack(w_hid_list, axis=0)            # (L, W, W)
    b_hid = jnp.stack(b_hid_list, axis=0)            # (L, 1, W)

    w_out, b_out = linear(keys[-1], layer_width, OUT_FEATURES)
    return w_in, b_in, w_hid, b_hid, w_out, b_out


def mlp_reference(x, params, model_type, mxu_dtype=None):
    """Pure-JAX reference. mxu_dtype=jnp.bfloat16 emulates the kernel's MXU input cast."""
    w_in, b_in, w_hid, b_hid, w_out, b_out = params

    def dot(a, w):
        if mxu_dtype is not None:
            a = a.astype(mxu_dtype)
            w = w.astype(mxu_dtype)
        return jnp.dot(a, w, preferred_element_type=jnp.float32)

    h = jnp.maximum(dot(x, w_in) + b_in, 0.0)
    for l in range(w_hid.shape[0]):
        h = jnp.maximum(dot(h, w_hid[l]) + b_hid[l], 0.0)
    y = dot(h, w_out) + b_out
    if model_type == "Regression":
        return jnp.maximum(y, 0.0)
    return jax.nn.sigmoid(y)


if __name__ == "__main__":
    num_layers = 2
    layer_width = 32
    batch = 8

    key = jax.random.PRNGKey(0)
    k_x, k_p, k_x2 = jax.random.split(key, 3)

    x = jax.random.normal(k_x, (batch, IN_FEATURES), dtype=jnp.float32)
    params = init_params(k_p, num_layers, layer_width)

    # Regression head.
    out = jax.block_until_ready(mlp_forward(x, params, "Regression"))
    assert out.shape == (batch, OUT_FEATURES)
    ref_bf16 = mlp_reference(x, params, "Regression", mxu_dtype=jnp.bfloat16)
    ref_f32 = mlp_reference(x, params, "Regression")
    assert jnp.allclose(out, ref_bf16, atol=2e-3, rtol=2e-3)
    assert jnp.allclose(out, ref_f32, atol=5e-2, rtol=5e-2)

    # Classification head.
    out_cls = jax.block_until_ready(mlp_forward(x, params, "Classification"))
    ref_cls_bf16 = mlp_reference(x, params, "Classification", mxu_dtype=jnp.bfloat16)
    ref_cls_f32 = mlp_reference(x, params, "Classification")
    assert jnp.allclose(out_cls, ref_cls_bf16, atol=2e-3, rtol=2e-3)
    assert jnp.allclose(out_cls, ref_cls_f32, atol=5e-2, rtol=5e-2)

    # Exercise the multi-tile batch grid + padding path (grid = 3 tiles of 128).
    x_big = jax.random.normal(k_x2, (300, IN_FEATURES), dtype=jnp.float32)
    out_big = jax.block_until_ready(
        mlp_forward(x_big, params, "Regression", tile_b=128)
    )
    ref_big = mlp_reference(x_big, params, "Regression", mxu_dtype=jnp.bfloat16)
    assert out_big.shape == (300, OUT_FEATURES)
    assert jnp.allclose(out_big, ref_big, atol=2e-3, rtol=2e-3)

    print("KERNEL_OK")
</pallas_src>

<mosaic_0001>
module attributes {stable_mosaic.version = 11 : i64} {
  func.func @mlp_kernel(%arg0: i32, %arg1: memref<8x9xbf16, #tpu.memory_space<vmem>>, %arg2: memref<9x32xbf16, #tpu.memory_space<vmem>>, %arg3: memref<1x32xf32, #tpu.memory_space<vmem>>, %arg4: memref<2x32x32xbf16, #tpu.memory_space<vmem>>, %arg5: memref<2x1x32xf32, #tpu.memory_space<vmem>>, %arg6: memref<32x9xbf16, #tpu.memory_space<vmem>>, %arg7: memref<1x9xf32, #tpu.memory_space<vmem>>, %arg8: memref<8x9xf32, #tpu.memory_space<vmem>>) attributes {dimension_semantics = [#tpu.dimension_semantics<parallel>], iteration_bounds = array<i64: 1>, scalar_prefetch = 0 : i64, scratch_operands = 0 : i64, tpu.core_type = #tpu.core_type<tc>, window_params = [{transform_indices = @transform_0, window_bounds = array<i64: 8, 9>}, {pipeline_mode = #tpu.pipeline_mode<synchronous>, transform_indices = @transform_1, window_bounds = array<i64: 9, 32>}, {pipeline_mode = #tpu.pipeline_mode<synchronous>, transform_indices = @transform_2, window_bounds = array<i64: 1, 32>}, {pipeline_mode = #tpu.pipeline_mode<synchronous>, transform_indices = @transform_3, window_bounds = array<i64: 2, 32, 32>}, {pipeline_mode = #tpu.pipeline_mode<synchronous>, transform_indices = @transform_4, window_bounds = array<i64: 2, 1, 32>}, {pipeline_mode = #tpu.pipeline_mode<synchronous>, transform_indices = @transform_5, window_bounds = array<i64: 32, 9>}, {pipeline_mode = #tpu.pipeline_mode<synchronous>, transform_indices = @transform_6, window_bounds = array<i64: 1, 9>}, {transform_indices = @transform_7, window_bounds = array<i64: 8, 9>}]} {
    %c0 = arith.constant 0 : index
    %c0_0 = arith.constant 0 : index
    %0 = vector.load %arg1[%c0, %c0_0] : memref<8x9xbf16, #tpu.memory_space<vmem>>, vector<8x9xbf16>
    %c0_1 = arith.constant 0 : index
    %c0_2 = arith.constant 0 : index
    %1 = vector.load %arg2[%c0_1, %c0_2] : memref<9x32xbf16, #tpu.memory_space<vmem>>, vector<9x32xbf16>
    %cst = arith.constant dense<0.000000e+00> : vector<8x32xf32>
    %2 = tpu.matmul %0, %1, %cst {dimension_numbers = #tpu.dot_dimension_numbers<[1], [0], [0], [1], [0, 0, 1, 1], [], []>} : vector<8x9xbf16>, vector<9x32xbf16>, vector<8x32xf32> -> vector<8x32xf32>
    %c0_3 = arith.constant 0 : index
    %c0_4 = arith.constant 0 : index
    %3 = vector.load %arg3[%c0_3, %c0_4] : memref<1x32xf32, #tpu.memory_space<vmem>>, vector<1x32xf32>
    %4 = vector.broadcast %3 : vector<1x32xf32> to vector<8x32xf32>
    %5 = arith.addf %2, %4 : vector<8x32xf32>
    %cst_5 = arith.constant 0.000000e+00 : f32
    %6 = vector.broadcast %cst_5 : f32 to vector<8x32xf32>
    %7 = arith.maximumf %5, %6 : vector<8x32xf32>
    %8 = arith.truncf %7 : vector<8x32xf32> to vector<8x32xbf16>
    %c0_6 = arith.constant 0 : index
    %c0_7 = arith.constant 0 : index
    %c0_8 = arith.constant 0 : index
    %9 = vector.load %arg4[%c0_6, %c0_7, %c0_8] : memref<2x32x32xbf16, #tpu.memory_space<vmem>>, vector<1x32x32xbf16>
    %10 = vector.shape_cast %9 : vector<1x32x32xbf16> to vector<32x32xbf16>
    %cst_9 = arith.constant dense<0.000000e+00> : vector<8x32xf32>
    %11 = tpu.matmul %8, %10, %cst_9 {dimension_numbers = #tpu.dot_dimension_numbers<[1], [0], [0], [1], [0, 0, 1, 1], [], []>} : vector<8x32xbf16>, vector<32x32xbf16>, vector<8x32xf32> -> vector<8x32xf32>
    %c0_10 = arith.constant 0 : index
    %c0_11 = arith.constant 0 : index
    %c0_12 = arith.constant 0 : index
    %12 = vector.load %arg5[%c0_10, %c0_11, %c0_12] : memref<2x1x32xf32, #tpu.memory_space<vmem>>, vector<1x1x32xf32>
    %13 = vector.shape_cast %12 : vector<1x1x32xf32> to vector<1x32xf32>
    %14 = vector.broadcast %13 : vector<1x32xf32> to vector<8x32xf32>
    %15 = arith.addf %11, %14 : vector<8x32xf32>
    %cst_13 = arith.constant 0.000000e+00 : f32
    %16 = vector.broadcast %cst_13 : f32 to vector<8x32xf32>
    %17 = arith.maximumf %15, %16 : vector<8x32xf32>
    %18 = arith.truncf %17 : vector<8x32xf32> to vector<8x32xbf16>
    %c1 = arith.constant 1 : index
    %c0_14 = arith.constant 0 : index
    %c0_15 = arith.constant 0 : index
    %19 = vector.load %arg4[%c1, %c0_14, %c0_15] : memref<2x32x32xbf16, #tpu.memory_space<vmem>>, vector<1x32x32xbf16>
    %20 = vector.shape_cast %19 : vector<1x32x32xbf16> to vector<32x32xbf16>
    %cst_16 = arith.constant dense<0.000000e+00> : vector<8x32xf32>
    %21 = tpu.matmul %18, %20, %cst_16 {dimension_numbers = #tpu.dot_dimension_numbers<[1], [0], [0], [1], [0, 0, 1, 1], [], []>} : vector<8x32xbf16>, vector<32x32xbf16>, vector<8x32xf32> -> vector<8x32xf32>
    %c1_17 = arith.constant 1 : index
    %c0_18 = arith.constant 0 : index
    %c0_19 = arith.constant 0 : index
    %22 = vector.load %arg5[%c1_17, %c0_18, %c0_19] : memref<2x1x32xf32, #tpu.memory_space<vmem>>, vector<1x1x32xf32>
    %23 = vector.shape_cast %22 : vector<1x1x32xf32> to vector<1x32xf32>
    %24 = vector.broadcast %23 : vector<1x32xf32> to vector<8x32xf32>
    %25 = arith.addf %21, %24 : vector<8x32xf32>
    %cst_20 = arith.constant 0.000000e+00 : f32
    %26 = vector.broadcast %cst_20 : f32 to vector<8x32xf32>
    %27 = arith.maximumf %25, %26 : vector<8x32xf32>
    %28 = arith.truncf %27 : vector<8x32xf32> to vector<8x32xbf16>
    %c0_21 = arith.constant 0 : index
    %c0_22 = arith.constant 0 : index
    %29 = vector.load %arg6[%c0_21, %c0_22] : memref<32x9xbf16, #tpu.memory_space<vmem>>, vector<32x9xbf16>
    %cst_23 = arith.constant dense<0.000000e+00> : vector<8x9xf32>
    %30 = tpu.matmul %28, %29, %cst_23 {dimension_numbers = #tpu.dot_dimension_numbers<[1], [0], [0], [1], [0, 0, 1, 1], [], []>} : vector<8x32xbf16>, vector<32x9xbf16>, vector<8x9xf32> -> vector<8x9xf32>
    %c0_24 = arith.constant 0 : index
    %c0_25 = arith.constant 0 : index
    %31 = vector.load %arg7[%c0_24, %c0_25] : memref<1x9xf32, #tpu.memory_space<vmem>>, vector<1x9xf32>
    %32 = vector.broadcast %31 : vector<1x9xf32> to vector<8x9xf32>
    %33 = arith.addf %30, %32 : vector<8x9xf32>
    %cst_26 = arith.constant 0.000000e+00 : f32
    %34 = vector.broadcast %cst_26 : f32 to vector<8x9xf32>
    %35 = arith.maximumf %33, %34 : vector<8x9xf32>
    %c0_27 = arith.constant 0 : index
    %c0_28 = arith.constant 0 : index
    %36 = vector.load %arg8[%c0_27, %c0_28] : memref<8x9xf32, #tpu.memory_space<vmem>>, vector<8x9xf32>
    tpu.vector_store %arg8[%c0_27, %c0_28], %35 {strides = array<i32>} : memref<8x9xf32, #tpu.memory_space<vmem>>, vector<8x9xf32>,
    return
  }
  func.func @transform_0(%arg0: i32) -> (i32, i32) {
    %c0_i32 = arith.constant 0 : i32
    %c0_i32_0 = arith.constant 0 : i32
    return %arg0, %c0_i32 : i32, i32
  }
  func.func @transform_1(%arg0: i32) -> (i32, i32) {
    %c0_i32 = arith.constant 0 : i32
    %c0_i32_0 = arith.constant 0 : i32
    %c0_i32_1 = arith.constant 0 : i32
    return %c0_i32, %c0_i32_0 : i32, i32
  }
  func.func @transform_2(%arg0: i32) -> (i32, i32) {
    %c0_i32 = arith.constant 0 : i32
    %c0_i32_0 = arith.constant 0 : i32
    %c0_i32_1 = arith.constant 0 : i32
    return %c0_i32, %c0_i32_0 : i32, i32
  }
  func.func @transform_3(%arg0: i32) -> (i32, i32, i32) {
    %c0_i32 = arith.constant 0 : i32
    %c0_i32_0 = arith.constant 0 : i32
    %c0_i32_1 = arith.constant 0 : i32
    %c0_i32_2 = arith.constant 0 : i32
    return %c0_i32, %c0_i32_0, %c0_i32_1 : i32, i32, i32
  }
  func.func @transform_4(%arg0: i32) -> (i32, i32, i32) {
    %c0_i32 = arith.constant 0 : i32
    %c0_i32_0 = arith.constant 0 : i32
    %c0_i32_1 = arith.constant 0 : i32
    %c0_i32_2 = arith.constant 0 : i32
    return %c0_i32, %c0_i32_0, %c0_i32_1 : i32, i32, i32
  }
  func.func @transform_5(%arg0: i32) -> (i32, i32) {
    %c0_i32 = arith.constant 0 : i32
    %c0_i32_0 = arith.constant 0 : i32
    %c0_i32_1 = arith.constant 0 : i32
    return %c0_i32, %c0_i32_0 : i32, i32
  }
  func.func @transform_6(%arg0: i32) -> (i32, i32) {
    %c0_i32 = arith.constant 0 : i32
    %c0_i32_0 = arith.constant 0 : i32
    %c0_i32_1 = arith.constant 0 : i32
    return %c0_i32, %c0_i32_0 : i32, i32
  }
  func.func @transform_7(%arg0: i32) -> (i32, i32) {
    %c0_i32 = arith.constant 0 : i32
    %c0_i32_0 = arith.constant 0 : i32
    return %arg0, %c0_i32 : i32, i32
  }
}

</mosaic_0001>

<bundles_post_ra>
// kernel: tpu_custom_call.1
= control target key start
LH: loop header
LB: loop body
LE: loop exit
PB: predicated region body
PF: predicated region fallthrough
CT: control target
= control target key end

     0   :  { %12 = vsyncpa [#allocation3], 0  ;;  %s400_s0 = inlined_call_operand.vmem [shape: bf16[8,9], index: 0, kind: input, shape index: {}]   ;;  %s401_s1 = inlined_call_operand.vmem [shape: bf16[9,32], index: 1, kind: input, shape index: {}]   ;;  %s402_s2 = inlined_call_operand.vmem [shape: f32[1,32], index: 2, kind: input, shape index: {}]   ;;  %s403_s3 = inlined_call_operand.hbm [shape: bf16[2,32,32], index: 3, kind: input, shape index: {}]   ;;  %s404_s4 = inlined_call_operand.vmem [shape: f32[2,1,32], index: 4, kind: input, shape index: {}]   ;;  %s405_s5 = inlined_call_operand.vmem [shape: bf16[32,9], index: 5, kind: input, shape index: {}]   ;;  %s406_s6 = inlined_call_operand.vmem [shape: f32[1,9], index: 6, kind: input, shape index: {}]   ;;  %s407_s7 = inlined_call_operand.hbm [shape: f32[8,9], index: 7, kind: output, shape index: {}]  }
   0x1   :  { %13 = vsyncpa [#allocation4], 0  ;;  %s24_s26 = sshll.u32 %s403_s3, 4  ;;  %s317_s27 = smov [#allocation2]   ;;  %s25_s26 = int_to_ptr.hbm [resolvable:$true] %s24_s26 }
   0x2   :  { %s26_s28 = sshll.u32 %s317_s27, 4  ;;  %s318_s29 = smov 64   ;;  %s27_s28 = int_to_ptr.vmem [resolvable:$true] %s26_s28 }
   0x3   :  { %s319_s30 = smov 4  }
   0x4   :  { %32 = dma.hbm_to_vmem [thread:$0]  %s25_s26, 512, %s27_s28, [#allocation3], %s318_s29, %s318_s29, %s319_s30  }
   0x5   :  { %313 = dma.done.wait [#allocation3], 512  }
   0x6   :  { %314 = vsyncadd [#allocation3], 4294966784  ;;  %vm60_vm0 = vcmask 1043456   ;;  %vm61_vm1 = vcmask 1044480   ;;  %v320_v0 = vmov 65535   ;;  %vm56_vm2 = vcmask 72704  }
   0x7   :  { %v62_v1 = vsel %vm60_vm0, 4294967295, %v320_v0  ;;  %v218_v2 = vld [vmem:[%s401_s1] sm:$0xf]  ;;  %v249_v3 = vld [vmem:[%s401_s1] sm:$0x10]  ;;  %v251_v8 = vld [vmem:[#allocation2 + $0x8] sm:$0xff] }
   0x8   :  { %v63_v4 = vsel %vm61_vm1, %v62_v1, 0  ;;  %v219_v5 = vor.u32 %v249_v3, %v218_v2  ;;  %v44_v7 = vld [vmem:[%s400_s0] sm:$0xf]  ;;  %112 = vmatpush.bf16.msra.mxu1 %v251_v8  ;;  %vm102_vm3 = vcmask 261120   ;;  %v253_v16 = vld [vmem:[#allocation2 + $0x18] sm:$0xff]  ;;  %v252_v17 = vld [vmem:[#allocation2 + $0x10] sm:$0xff] }
   0x9   :  { %v250_v9 = vld [vmem:[#allocation2] sm:$0xff]  ;;  %152 = vmatpush.bf16.msra.mxu2 %v253_v16  ;;  %v255_v24 = vld [vmem:[%s405_s5 + $0x8] sm:$0xff]  ;;  %s321_s22 = smov [#allocation5]   ;;  %s206_s25 = sshll.u32 %s407_s7, 4  ;;  %s207_s25 = int_to_ptr.hbm [resolvable:$true] %s206_s25 }
   0xa   :  { %v65_v6 = vand.u32 %v219_v5, %v63_v4  ;;  %v261_v10 = vld [vmem:[%s402_s2] ss:$0 sm:$0xff]  ;;  %190 = vmatpush.bf16.msra.mxu3 %v255_v24  ;;  %v263_v26 = vld [vmem:[%s404_s4 + $0x1] ss:$0 sm:$0xff]  ;;  %s204_s23 = sshll.u32 %s321_s22, 4  ;;  %s205_s23 = int_to_ptr.vmem [resolvable:$true] %s204_s23 }
   0xb   :  { %v262_v18 = vld [vmem:[%s404_s4] ss:$0 sm:$0xff] }
   0xc   :  { %74 = vmatpush.bf16.msra.mxu0 %v65_v6  ;;  %113 = vmatpush.bf16.msra.mxu1 %v250_v9  ;;  %v254_v25 = vld [vmem:[%s405_s5] sm:$0xff] }
   0xd   :  { %153 = vmatpush.bf16.msra.mxu2 %v252_v17  ;;  %v264_v32 = vld [vmem:[%s406_s6] ss:$0 sm:$0xff] }
   0xe   :  { %191 = vmatpush.bf16.msra.mxu3 %v254_v25 }
   0xf   :  { %220 = vmatmul.msk.bf16.vlgmr.msra.gmra.mxu0 %vm56_vm2, %v44_v7 }
  0x8c   :  { %v76_v11 = vpop.f32.mrf.mxu0 }
  0x8d   :  { %v77_v12 = vadd.f32 %v261_v10, %v76_v11 }
  0x8f   :  { %v80_v13 = vmax.f32 %v77_v12, 0.0 }
  0x91   :  { %v81_v14 = vpack.c.bf16 %v80_v13, %v80_v13 }
  0x93   :  { %229 = vmatmul.msk.bf16.vlgmr.msra.gmra.mxu1 %vm102_vm3, %v81_v14 }
  0x94   :  { %v78_v15 = vpop.f32.mrf.mxu0 }
 0x110   :  { %v115_v19 = vpop.f32.mrf.mxu1 }
 0x111   :  { %v116_v20 = vadd.f32 %v262_v18, %v115_v19 }
 0x113   :  { %v119_v21 = vmax.f32 %v116_v20, 0.0 }
 0x115   :  { %v120_v22 = vpack.c.bf16 %v119_v21, %v119_v21 }
 0x117   :  { %239 = vmatmul.msk.bf16.vlgmr.msra.gmra.mxu2 %vm102_vm3, %v120_v22 }
 0x118   :  { %v117_v23 = vpop.f32.mrf.mxu1 }
 0x19a   :  { %v155_v27 = vpop.f32.mrf.mxu2 }
 0x19b   :  { %v156_v28 = vadd.f32 %v263_v26, %v155_v27 }
 0x19d   :  { %v159_v29 = vmax.f32 %v156_v28, 0.0 }
 0x19f   :  { %v160_v30 = vpack.c.bf16 %v159_v29, %v159_v29 }
 0x1a1   :  { %248 = vmatmul.msk.bf16.vlgmr.msra.gmra.mxu3 %vm102_vm3, %v160_v30 }
 0x1a2   :  { %v157_v31 = vpop.f32.mrf.mxu2 }
 0x224   :  { %v193_v33 = vpop.f32.mrf.mxu3 }
 0x225   :  { %v194_v34 = vadd.f32 %v264_v32, %v193_v33 }
 0x227   :  { %v197_v35 = vmax.f32 %v194_v34, 0.0 }
 0x229   :  { %198 = vst.msk [vmem:[#allocation5] sm:$0xff] %vm56_vm2, %v197_v35 }
 0x22a   :  { %209 = dma.vmem_to_hbm [thread:$0]  %s205_s23, 128, %s207_s25, [#allocation4]  }
 0x22c   :  { %v195_v36 = vpop.f32.mrf.mxu3 }
 0x22d   :  { %315 = dma.done.wait [#allocation4], 128  }
 0x22e   :  { %316 = vsyncadd [#allocation4], 4294967168 }
 0x22f   :  { %214 = vsyncpa [#allocation3], 1 }
 0x230   :  { %215 = vsyncpa [#allocation4], 1 }

</bundles_post_ra>
